<compile_context>
chip_gen: v6e
topology: v6e:2x2x1
jax: 0.10.0
libtpu: 0.0.40
codegen_flags: <defaults>
</compile_context>

<pallas_src>
import math

import numpy as np
import jax
import jax.numpy as jnp
from jax.experimental import pallas as pl
from jax.experimental.pallas import tpu as pltpu


# ----------------------------- tree utilities (host-side, plain python) -----------------------------
class TreeTools:
    """Tree nodes are tuples (label, children); leaves are plain ints (class values)."""

    def get_subtrees(self, tree):
        yield tree
        for child in tree[1]:
            if isinstance(child, tuple):
                yield from self.get_subtrees(child)

    def get_paths(self, tree, path=()):
        for i, child in enumerate(tree[1]):
            if isinstance(child, tuple):
                yield from self.get_paths(child, path + (i,))
            else:
                yield (path + (i,), child)

    def get_nodes(self, tree, path):
        subtrees = list(self.get_subtrees(tree))
        index_of = {id(t): i for i, t in enumerate(subtrees)}
        nodes = []
        node = tree
        for step in path:
            nodes.append(index_of[id(node)])
            node = node[1][step]
        return nodes


def _round_up(n, m):
    return ((n + m - 1) // m) * m


# ----------------------------- fused Pallas kernel -----------------------------
def _fused_kernel(x_ref, wc_ref, bc_ref, mask_ref, wf_ref, bf_ref, o_ref, pooled_ref):
    """One batch tile: im2row conv (all filter sizes in one MXU dot) + bias + ReLU + mask +
    max-over-time (chunked so only a small f32 activation is ever live) + fused FC heads.

    x_ref:      (bn*S, E)          f32   flattened (batch, time) rows; cast to bf16 in-kernel
    wc_ref:     (FS_MAX*E, Cp)     bf16  im2row-packed conv weights (zero rows for short filters)
    bc_ref:     (1, Cp)            f32   packed conv bias
    mask_ref:   (S, Cp)            f32   1.0 iff time step t is a valid conv position for that filter
    wf_ref:     (Cp, Op)           bf16  fused hierarchical FC weights (zero padded)
    bf_ref:     (1, Op)            f32   fused FC bias
    o_ref:      (1, bn, Op)        f32   logits (lane-dense, padded)
    pooled_ref: (n_chunks, cb, Cp) f32   scratch: per-sample max-over-time features
    """
    r, e = x_ref.shape
    s, cp = mask_ref.shape
    n_chunks, cb, _ = pooled_ref.shape
    fs_max = wc_ref.shape[0] // e
    cr = cb * s                           # rows per chunk (whole samples per chunk)

    # Hoisted loop invariants (JAX does not CSE broadcasts / repeated ref loads).
    wc = wc_ref[...]                      # (FS_MAX*E, Cp) bf16
    bias = bc_ref[...]                    # (1, Cp)  f32
    tmask = mask_ref[...]                 # (S, Cp)  f32

    def chunk_body(c):
        base = c * cr
        if not isinstance(base, int):
            base = pl.multiple_of(base, 8)        # cr is a multiple of 8 (S % 8 == 0)
        xc = x_ref[pl.ds(base, cr), :]            # (cr, E) f32 -- roll the SMALL input, not output
        # im2row: tap k contributes x[row + k].  Rolled rows wrap only onto time steps that the
        # per-filter validity mask zeroes: tap k has nonzero weight only for filters with fs > k,
        # and those filters mask every t >= S - fs + 1 >= S - k, so wrapped rows are harmless.
        pieces = [xc] + [pltpu.roll(xc, shift=cr - k, axis=0) for k in range(1, fs_max)]
        xs = jnp.concatenate(pieces, axis=-1).astype(jnp.bfloat16)   # (cr, FS_MAX*E) bf16
        acc = jnp.dot(xs, wc, preferred_element_type=jnp.float32)    # single MXU pass, K=FS_MAX*E
        acc = jnp.maximum(acc + bias, 0.0)                           # conv bias + ReLU (f32 VPU)
        acc = acc.reshape(cb, s, cp) * tmask[None]                   # zero invalid trailing positions
        pooled_ref[c] = jnp.max(acc, axis=1)                         # (cb, Cp) max over time

    if n_chunks == 1:
        chunk_body(0)                     # fully static path (demo sizes)
    else:
        pl.loop(0, n_chunks)(chunk_body)  # bounded live ranges at prod sizes

    pooled = pooled_ref[...].reshape(n_chunks * cb, cp)              # (bn, Cp) f32, never leaves VMEM
    logits = jnp.dot(pooled.astype(wf_ref.dtype), wf_ref[...],
                     preferred_element_type=jnp.float32) + bf_ref[...]
    o_ref[0] = logits


def _pick_tiles(N, S, E, Cp, Op, fs_max):
    """Pick (bn, cb): batch-tile size and samples per in-kernel chunk.

    bn is capped at N//2 so the grid has >= 2 steps (both v7x TensorCores get work) and sized
    against a conservative cross-generation VMEM budget (fits v7x's 64 MiB with headroom; v5e/v6e
    simply have more slack).  cb keeps the live f32 chunk activation small.
    """
    budget = 24 * 1024 * 1024
    chunk_budget = 2 * 1024 * 1024

    def pick_cb(bn):
        cb = 1
        for c in range(1, bn + 1):
            if bn % c == 0 and c * S * Cp * 4 <= chunk_budget:
                cb = c
        return cb

    w_bytes = (fs_max * E * Cp + Cp * Op) * 2 + (Cp + Op) * 4 + S * Cp * 4
    max_bn = max(1, N // 2)
    for b in range(max_bn, 0, -1):
        if N % b:
            continue
        cb = pick_cb(b)
        est = (2 * b * S * E * 4                # double-buffered f32 input tile
               + 2 * b * Op * 4                 # double-buffered output tile
               + b * Cp * 4                     # pooled scratch
               + 4 * cb * S * Cp * 4            # live f32 chunk temporaries
               + 2 * cb * S * fs_max * E * 4    # im2row pieces + concat
               + w_bytes)
        if est <= budget:
            return b, cb
    return 1, 1


def fused_text_cnn_forward(x, conv_w, conv_b, mask, fc_w, fc_b):
    """x: (N, S, E) f32 -> padded logits (N, Op) f32 via one fused pallas_call."""
    N, S, E = x.shape
    KE, Cp = conv_w.shape
    fs_max = KE // E
    Op = fc_w.shape[1]
    assert S % 8 == 0, "sequence_length must be a multiple of 8 (f32 sublane tiling)"

    bn, cb = _pick_tiles(N, S, E, Cp, Op, fs_max)
    n_tiles = N // bn
    n_chunks = bn // cb
    x2 = x.reshape(N * S, E)                    # flat (batch*time) rows, E on lanes, f32 (no extra cast pass)

    # TODO(synk): if an xprof trace at prod sizes shows exposed DMA on the x stream (v5e),
    #             add pipeline_mode=pl.Buffered(3) to the x BlockSpec after confirming VMEM headroom.
    out = pl.pallas_call(
        _fused_kernel,
        out_shape=jax.ShapeDtypeStruct((n_tiles, bn, Op), jnp.float32),
        grid=(n_tiles,),
        in_specs=[
            pl.BlockSpec((bn * S, E), lambda b: (b, 0)),
            pl.BlockSpec((KE, Cp), lambda b: (0, 0)),
            pl.BlockSpec((1, Cp), lambda b: (0, 0)),
            pl.BlockSpec((S, Cp), lambda b: (0, 0)),
            pl.BlockSpec((Cp, Op), lambda b: (0, 0)),
            pl.BlockSpec((1, Op), lambda b: (0, 0)),
        ],
        out_specs=pl.BlockSpec((1, bn, Op), lambda b: (b, 0, 0)),
        scratch_shapes=[pltpu.VMEM((n_chunks, cb, Cp), jnp.float32)],
        compiler_params=pltpu.CompilerParams(
            dimension_semantics=("parallel",),
            vmem_limit_bytes=32 * 1024 * 1024,
        ),
    )(x2, conv_w, conv_b, mask, fc_w, fc_b)
    return out.reshape(N, Op)


# ----------------------------- model -----------------------------
class HierarchicalTextClassifyCnnNet:
    def __init__(self, embedding_size, sequence_length, tree,
                 filter_sizes=(3, 4, 5), out_channels=32, key=None):
        self._tree_tools = TreeTools()
        self.tree = tree
        self.filter_sizes = list(filter_sizes)
        self.out_channels = out_channels
        self.embedding_size = embedding_size
        self.sequence_length = sequence_length
        assert max(self.filter_sizes) <= sequence_length

        subtrees = list(self._tree_tools.get_subtrees(tree))
        self.fc_widths = [len(st[1]) for st in subtrees]          # classes per hierarchy node
        self.fc_offsets = []
        off = 0
        for w in self.fc_widths:
            self.fc_offsets.append(off)
            off += w
        self.total_fc_out = off

        self.value_to_path_and_nodes = {}
        for path, value in self._tree_tools.get_paths(tree):
            self.value_to_path_and_nodes[value] = (path, self._tree_tools.get_nodes(tree, path))

        # ---- per-class gather tables for the vectorized hierarchical cross-entropy ----
        max_depth = max(len(p) for p, _ in self.value_to_path_and_nodes.values())
        max_val = max(self.value_to_path_and_nodes.keys())
        gidx = np.zeros((max_val + 1, max_depth), np.int32)
        gmsk = np.zeros((max_val + 1, max_depth), np.float32)
        for v, (path, nodes) in self.value_to_path_and_nodes.items():
            for lvl, (step, node) in enumerate(zip(path, nodes)):
                gidx[v, lvl] = self.fc_offsets[node] + step
                gmsk[v, lvl] = 1.0
        self._gather_idx = jnp.asarray(gidx)
        self._gather_mask = jnp.asarray(gmsk)
        self.max_depth = max_depth

        # ---------------- deterministic parameter init ----------------
        key = jax.random.PRNGKey(0) if key is None else key
        C = out_channels
        E = embedding_size
        S = sequence_length
        nF = len(self.filter_sizes)
        F = C * nF
        FS_MAX = max(self.filter_sizes)
        keys = jax.random.split(key, nF + len(self.fc_widths))

        # TODO(synk): on v6e/v7x, ~40% of the packed conv MXU work is zero padding (short-filter
        #             taps + C_pad); raising out_channels so nF*C fills 128 lanes removes it.
        self.C_pad = _round_up(F, 128)                  # lane-dense channel axis
        self.O_pad = _round_up(self.total_fc_out, 128)  # lane-dense logits store

        # Conv2d(1, C, (fs, E)) per filter, taps zero-padded to FS_MAX, channel-packed, then
        # flattened to im2row layout (row index = k*E + e).
        wc = np.zeros((FS_MAX, E, self.C_pad), np.float32)
        for i, fs in enumerate(self.filter_sizes):
            fan_in = fs * E                              # in_channels = 1
            bound = 1.0 / math.sqrt(fan_in)              # PyTorch Conv2d default-style init
            wi = np.asarray(jax.random.uniform(keys[i], (fs, E, C), jnp.float32, -bound, bound))
            wc[:fs, :, i * C:(i + 1) * C] = wi           # taps k >= fs stay zero (roll-wrap safety)
        self.conv_w_packed = jnp.asarray(wc.reshape(FS_MAX * E, self.C_pad), jnp.bfloat16)
        # TODO(synk): FlatCnnLayer source not provided; conv bias init left at zero, dropout omitted.
        self.conv_b_packed = jnp.zeros((1, self.C_pad), jnp.float32)

        # Time-validity mask: t valid for filter i iff t < S - fs_i + 1 (ReLU>=0 so 0-mask is safe).
        mask = np.zeros((S, self.C_pad), np.float32)
        for i, fs in enumerate(self.filter_sizes):
            mask[: S - fs + 1, i * C:(i + 1) * C] = 1.0
        self.time_mask = jnp.asarray(mask)

        # All hierarchical FC heads fused into one (C_pad, O_pad) matmul.
        wf = np.zeros((self.C_pad, self.O_pad), np.float32)
        bf = np.zeros((1, self.O_pad), np.float32)
        for j, width in enumerate(self.fc_widths):
            gain = math.sqrt(2.0)                        # init.xavier_uniform(gain=sqrt(2))
            bound = gain * math.sqrt(6.0 / (F + width))
            wj = np.asarray(jax.random.uniform(keys[nF + j], (F, width), jnp.float32, -bound, bound))
            wf[:F, self.fc_offsets[j]:self.fc_offsets[j] + width] = wj
            bf[0, self.fc_offsets[j]:self.fc_offsets[j] + width] = 0.1   # init.constant(bias, 0.1)
        self.fc_w_packed = jnp.asarray(wf, jnp.bfloat16)
        self.fc_b_packed = jnp.asarray(bf)

        # ---------------- jitted device path: fused kernel + vectorized hierarchical CE ----------------
        node_slices = list(zip(self.fc_offsets, self.fc_widths))
        total_out = self.total_fc_out

        def _device_forward(inputs, targets, conv_w, conv_b, tmask, fc_w, fc_b, gidx_t, gmsk_t):
            x = inputs[:, 0]                                         # NCHW -> (N, S, E); bf16 cast is in-kernel
            padded = fused_text_cnn_forward(x, conv_w, conv_b, tmask, fc_w, fc_b)
            all_logits = padded[:, :total_out]                       # (N, total_fc_out)
            # per-node log-softmax (static loop over the few hierarchy nodes)
            logp = jnp.concatenate(
                [jax.nn.log_softmax(all_logits[:, o:o + w], axis=-1) for o, w in node_slices],
                axis=1)
            idx = gidx_t[targets]                                    # (N, max_depth)
            msk = gmsk_t[targets]
            picked = jnp.take_along_axis(logp, idx, axis=1)
            losses = -(picked * msk).sum(axis=1)                     # summed CE along the label's path
            return all_logits, losses

        self._device_forward = jax.jit(_device_forward)

    def forward(self, inputs, targets):
        targets_np = np.asarray(targets, dtype=np.int32)
        all_logits, losses = self._device_forward(
            inputs, jnp.asarray(targets_np),
            self.conv_w_packed, self.conv_b_packed, self.time_mask,
            self.fc_w_packed, self.fc_b_packed,
            self._gather_idx, self._gather_mask)

        # Per-sample predicted logits along each label's path. This routing is data-dependent on
        # concrete label values (exactly like int(label.data[0]) in the PyTorch code), so it stays
        # on the host; the losses above are fully vectorized/jitted.
        predicts = []
        for n, label in enumerate(targets_np):
            _, nodes = self.value_to_path_and_nodes[int(label)]
            predicts.append([
                all_logits[n, self.fc_offsets[nd]:self.fc_offsets[nd] + self.fc_widths[nd]]
                for nd in nodes])
        return losses, predicts


# ----------------------------- demo -----------------------------
if __name__ == "__main__":
    N, S, E, C = 2, 16, 16, 32
    filter_sizes = [3, 4, 5]
    # Two-level hierarchy: root -> {A: leaves 0,1 ; B: leaves 2,3,4}
    tree = ("root", [("A", [0, 1]), ("B", [2, 3, 4])])

    model = HierarchicalTextClassifyCnnNet(E, S, tree, filter_sizes=filter_sizes,
                                           out_channels=C, key=jax.random.PRNGKey(0))

    key_in = jax.random.PRNGKey(0)
    inputs = jax.random.normal(jax.random.fold_in(key_in, 1), (N, 1, S, E), jnp.float32)
    targets = [0, 3]                                              # leaf class values

    losses, predicts = model.forward(inputs, targets)
    jax.block_until_ready(losses)
    for p in predicts:
        for logits in p:
            jax.block_until_ready(logits)
    print("KERNEL_OK")
</pallas_src>

<mosaic_0001>
module attributes {stable_mosaic.version = 11 : i64} {
  func.func @_fused_kernel(%arg0: i32, %arg1: memref<16x16xf32, #tpu.memory_space<vmem>>, %arg2: memref<80x128xbf16, #tpu.memory_space<vmem>>, %arg3: memref<1x128xf32, #tpu.memory_space<vmem>>, %arg4: memref<16x128xf32, #tpu.memory_space<vmem>>, %arg5: memref<128x128xbf16, #tpu.memory_space<vmem>>, %arg6: memref<1x128xf32, #tpu.memory_space<vmem>>, %arg7: memref<1x1x128xf32, #tpu.memory_space<vmem>>, %arg8: memref<1x1x128xf32, #tpu.memory_space<vmem>>) attributes {dimension_semantics = [#tpu.dimension_semantics<parallel>], iteration_bounds = array<i64: 2>, scalar_prefetch = 0 : i64, scratch_operands = 1 : i64, tpu.core_type = #tpu.core_type<tc>, window_params = [{transform_indices = @transform_0, window_bounds = array<i64: 16, 16>}, {pipeline_mode = #tpu.pipeline_mode<synchronous>, transform_indices = @transform_1, window_bounds = array<i64: 80, 128>}, {pipeline_mode = #tpu.pipeline_mode<synchronous>, transform_indices = @transform_2, window_bounds = array<i64: 1, 128>}, {pipeline_mode = #tpu.pipeline_mode<synchronous>, transform_indices = @transform_3, window_bounds = array<i64: 16, 128>}, {pipeline_mode = #tpu.pipeline_mode<synchronous>, transform_indices = @transform_4, window_bounds = array<i64: 128, 128>}, {pipeline_mode = #tpu.pipeline_mode<synchronous>, transform_indices = @transform_5, window_bounds = array<i64: 1, 128>}, {transform_indices = @transform_6, window_bounds = array<i64: 1, 1, 128>}]} {
    %c0 = arith.constant 0 : index
    %c0_0 = arith.constant 0 : index
    %0 = vector.load %arg2[%c0, %c0_0] : memref<80x128xbf16, #tpu.memory_space<vmem>>, vector<80x128xbf16>
    %c0_1 = arith.constant 0 : index
    %c0_2 = arith.constant 0 : index
    %1 = vector.load %arg3[%c0_1, %c0_2] : memref<1x128xf32, #tpu.memory_space<vmem>>, vector<1x128xf32>
    %c0_3 = arith.constant 0 : index
    %c0_4 = arith.constant 0 : index
    %2 = vector.load %arg4[%c0_3, %c0_4] : memref<16x128xf32, #tpu.memory_space<vmem>>, vector<16x128xf32>
    %c0_5 = arith.constant 0 : index
    %c0_6 = arith.constant 0 : index
    %3 = vector.load %arg1[%c0_5, %c0_6] : memref<16x16xf32, #tpu.memory_space<vmem>>, vector<16x16xf32>
    %c15_i32 = arith.constant 15 : i32
    %4 = tpu.dynamic_rotate %3 by %c15_i32 dim 0 : vector<16x16xf32>, i32 -> vector<16x16xf32>
    %c14_i32 = arith.constant 14 : i32
    %5 = tpu.dynamic_rotate %3 by %c14_i32 dim 0 : vector<16x16xf32>, i32 -> vector<16x16xf32>
    %c13_i32 = arith.constant 13 : i32
    %6 = tpu.dynamic_rotate %3 by %c13_i32 dim 0 : vector<16x16xf32>, i32 -> vector<16x16xf32>
    %c12_i32 = arith.constant 12 : i32
    %7 = tpu.dynamic_rotate %3 by %c12_i32 dim 0 : vector<16x16xf32>, i32 -> vector<16x16xf32>
    %8 = tpu.concatenate %3, %4, %5, %6, %7 in 1 : vector<16x16xf32>, vector<16x16xf32>, vector<16x16xf32>, vector<16x16xf32>, vector<16x16xf32> -> vector<16x80xf32>
    %9 = arith.truncf %8 : vector<16x80xf32> to vector<16x80xbf16>
    %cst = arith.constant dense<0.000000e+00> : vector<16x128xf32>
    %10 = tpu.matmul %9, %0, %cst {dimension_numbers = #tpu.dot_dimension_numbers<[1], [0], [0], [1], [0, 0, 1, 1], [], []>} : vector<16x80xbf16>, vector<80x128xbf16>, vector<16x128xf32> -> vector<16x128xf32>
    %11 = vector.broadcast %1 : vector<1x128xf32> to vector<16x128xf32>
    %12 = arith.addf %10, %11 : vector<16x128xf32>
    %cst_7 = arith.constant 0.000000e+00 : f32
    %13 = vector.broadcast %cst_7 : f32 to vector<16x128xf32>
    %14 = arith.maximumf %12, %13 : vector<16x128xf32>
    %15 = vector.shape_cast %14 : vector<16x128xf32> to vector<1x16x128xf32>
    %16 = vector.shape_cast %2 : vector<16x128xf32> to vector<1x16x128xf32>
    %17 = arith.mulf %15, %16 : vector<1x16x128xf32>
    %cst_8 = arith.constant dense<0xFF800000> : vector<1x128xf32>
    %18 = vector.multi_reduction <maximumf>, %17, %cst_8 [1] : vector<1x16x128xf32> to vector<1x128xf32>
    %c0_9 = arith.constant 0 : index
    %c0_10 = arith.constant 0 : index
    %c0_11 = arith.constant 0 : index
    %19 = vector.load %arg8[%c0_9, %c0_10, %c0_11] : memref<1x1x128xf32, #tpu.memory_space<vmem>>, vector<1x1x128xf32>
    %20 = vector.shape_cast %19 : vector<1x1x128xf32> to vector<1x128xf32>
    %21 = vector.shape_cast %18 : vector<1x128xf32> to vector<1x1x128xf32>
    tpu.vector_store %arg8[%c0_9, %c0_10, %c0_11], %21 {strides = array<i32>} : memref<1x1x128xf32, #tpu.memory_space<vmem>>, vector<1x1x128xf32>,
    %c0_12 = arith.constant 0 : index
    %c0_13 = arith.constant 0 : index
    %c0_14 = arith.constant 0 : index
    %22 = vector.load %arg8[%c0_12, %c0_13, %c0_14] : memref<1x1x128xf32, #tpu.memory_space<vmem>>, vector<1x1x128xf32>
    %23 = vector.shape_cast %22 : vector<1x1x128xf32> to vector<1x128xf32>
    %24 = arith.truncf %23 : vector<1x128xf32> to vector<1x128xbf16>
    %c0_15 = arith.constant 0 : index
    %c0_16 = arith.constant 0 : index
    %25 = vector.load %arg5[%c0_15, %c0_16] : memref<128x128xbf16, #tpu.memory_space<vmem>>, vector<128x128xbf16>
    %cst_17 = arith.constant dense<0.000000e+00> : vector<1x128xf32>
    %26 = tpu.matmul %24, %25, %cst_17 {dimension_numbers = #tpu.dot_dimension_numbers<[1], [0], [0], [1], [0, 0, 1, 1], [], []>} : vector<1x128xbf16>, vector<128x128xbf16>, vector<1x128xf32> -> vector<1x128xf32>
    %c0_18 = arith.constant 0 : index
    %c0_19 = arith.constant 0 : index
    %27 = vector.load %arg6[%c0_18, %c0_19] : memref<1x128xf32, #tpu.memory_space<vmem>>, vector<1x128xf32>
    %28 = arith.addf %26, %27 : vector<1x128xf32>
    %c0_20 = arith.constant 0 : index
    %c0_21 = arith.constant 0 : index
    %c0_22 = arith.constant 0 : index
    %29 = vector.load %arg7[%c0_20, %c0_21, %c0_22] : memref<1x1x128xf32, #tpu.memory_space<vmem>>, vector<1x1x128xf32>
    %30 = vector.shape_cast %29 : vector<1x1x128xf32> to vector<1x128xf32>
    %31 = vector.shape_cast %28 : vector<1x128xf32> to vector<1x1x128xf32>
    tpu.vector_store %arg7[%c0_20, %c0_21, %c0_22], %31 {strides = array<i32>} : memref<1x1x128xf32, #tpu.memory_space<vmem>>, vector<1x1x128xf32>,
    return
  }
  func.func @transform_0(%arg0: i32) -> (i32, i32) {
    %c0_i32 = arith.constant 0 : i32
    %c0_i32_0 = arith.constant 0 : i32
    return %arg0, %c0_i32 : i32, i32
  }
  func.func @transform_1(%arg0: i32) -> (i32, i32) {
    %c0_i32 = arith.constant 0 : i32
    %c0_i32_0 = arith.constant 0 : i32
    %c0_i32_1 = arith.constant 0 : i32
    return %c0_i32, %c0_i32_0 : i32, i32
  }
  func.func @transform_2(%arg0: i32) -> (i32, i32) {
    %c0_i32 = arith.constant 0 : i32
    %c0_i32_0 = arith.constant 0 : i32
    %c0_i32_1 = arith.constant 0 : i32
    return %c0_i32, %c0_i32_0 : i32, i32
  }
  func.func @transform_3(%arg0: i32) -> (i32, i32) {
    %c0_i32 = arith.constant 0 : i32
    %c0_i32_0 = arith.constant 0 : i32
    %c0_i32_1 = arith.constant 0 : i32
    return %c0_i32, %c0_i32_0 : i32, i32
  }
  func.func @transform_4(%arg0: i32) -> (i32, i32) {
    %c0_i32 = arith.constant 0 : i32
    %c0_i32_0 = arith.constant 0 : i32
    %c0_i32_1 = arith.constant 0 : i32
    return %c0_i32, %c0_i32_0 : i32, i32
  }
  func.func @transform_5(%arg0: i32) -> (i32, i32) {
    %c0_i32 = arith.constant 0 : i32
    %c0_i32_0 = arith.constant 0 : i32
    %c0_i32_1 = arith.constant 0 : i32
    return %c0_i32, %c0_i32_0 : i32, i32
  }
  func.func @transform_6(%arg0: i32) -> (i32, i32, i32) {
    %c0_i32 = arith.constant 0 : i32
    %c0_i32_0 = arith.constant 0 : i32
    %c0_i32_1 = arith.constant 0 : i32
    return %arg0, %c0_i32, %c0_i32_0 : i32, i32, i32
  }
}

</mosaic_0001>

<bundles_post_ra>
// kernel: neg.1
= control target key start
LH: loop header
LB: loop body
LE: loop exit
PB: predicated region body
PF: predicated region fallthrough
CT: control target
= control target key end

     0   :  { %2 = vsyncpa [#allocation1], 0  ;;  %s59_s0 = inlined_call_operand.vmem [shape: f32[2], index: 0, kind: input, shape index: {}]   ;;  %s60_s1 = inlined_call_operand.hbm [shape: f32[2], index: 1, kind: output, shape index: {}]  }
   0x1   :  { %v3_v0 = vld [vmem:[%s59_s0] sm:$0x1]  ;;  %s42_s0 = smov [#allocation0]  }
   0x2   :  { %v6_v1 = vxor.u32 2147483648, %v3_v0  ;;  %s13_s8 = sshll.u32 %s42_s0, 4  ;;  %s14_s8 = int_to_ptr.vmem [resolvable:$true] %s13_s8 }
   0x3   :  { %s20_s9 = scalar_lea.vmem %s14_s8, 16  ;;  %s24_s10 = scalar_lea.vmem %s14_s8, 32 }
   0x4   :  { %8 = vst [vmem:[#allocation0] sm:$0x1] %v6_v1  ;;  %p21_p0 = scmp.ne.s32.totalorder %s14_s8, %s20_s9  ;;  %p25_p1 = scmp.lt.s32.totalorder %s14_s8, %s14_s8 }
   0x5   :  { %p26_p2 = scmp.lt.s32.totalorder %s24_s10, %s20_s9 }
   0x7   :  { %p27_p3 = por %p26_p2, %p25_p1 }
   0x9   :  { %p28_p4 = pnand %p27_p3, %p21_p0 }
   0xb   :  { %31 = shalt.err (!%p28_p4)
}
   0xc   :  { %16 = dma.vmem_to_hbm [thread:$0]  %s14_s8, 16, %s60_s1, [#allocation1]  }
   0xd   :  { %40 = dma.done.wait [#allocation1], 16  }
   0xe   :  { %41 = vsyncadd [#allocation1], 4294967280 }
   0xf   :  { %18 = vsyncpa [#allocation1], 1 }

// kernel: _device_forward.1
= control target key start
LH: loop header
LB: loop body
LE: loop exit
PB: predicated region body
PF: predicated region fallthrough
CT: control target
= control target key end

     0   :  { %11 = vsyncpa [#allocation4], 0  ;;  %s1282_s0 = inlined_call_operand.hbm [shape: f32[32,16], index: 0, kind: input, shape index: {}]   ;;  %s1283_s1 = inlined_call_operand.hbm [shape: bf16[80,128], index: 1, kind: input, shape index: {}]   ;;  %s1284_s2 = inlined_call_operand.vmem [shape: f32[1,128], index: 2, kind: input, shape index: {}]   ;;  %s1285_s3 = inlined_call_operand.hbm [shape: f32[16,128], index: 3, kind: input, shape index: {}]   ;;  %s1286_s4 = inlined_call_operand.hbm [shape: bf16[128,128], index: 4, kind: input, shape index: {}]   ;;  %s1287_s5 = inlined_call_operand.vmem [shape: f32[1,128], index: 5, kind: input, shape index: {}]   ;;  %s1288_s6 = inlined_call_operand.vmem [shape: f32[2,1,128], index: 6, kind: output, shape index: {}]  }
   0x1   :  { %13 = vsyncpa [#allocation4 + $0x1], 0 }
   0x2   :  { %14 = vsyncpa [#allocation6], 0 }
   0x3   :  { %15 = vsyncpa [#allocation9], 0  ;;  %s1078_s21 = smov 0   ;;  %s1080_s22 = smov 0  }
   0x4   :  { %s1082_s23 = smov 0   ;;  %s1084_s24 = smov 0  }
   0x5 LB: > { %s1097_s25 = sadd.s32 4294967295, %s1027_s24   ;;  %p41_p0 = scmp.ne.s32.totalorder %s1019_s22, %s1015_s21  ;;  %s1027_s24 = sphi %s1084_s24, %s1306_s24   ;;  %s1023_s23 = sphi %s1082_s23, %s1305_s23   ;;  %s1019_s22 = sphi %s1080_s22, %s1304_s22   ;;  %s1015_s21 = sphi %s1078_s21, %s1303_s21  }
   0x6   : > { %p1289_p1 = scmp.eq.s32.totalorder %s1097_s25, 0  ;;  %p686_p2 = scmp.ge.s32.totalorder %s1027_s24, 1 }
   0x7   : > { %p183_p3 = scmp.lt.s32.totalorder %s1027_s24, 3  ;;  %s1029_s28 = smov [#allocation5]  }
   0x8   : > { %p1105_p4 = por %p1289_p1, %p41_p0  ;;  %s195_s29 = sshll.u32 %s1029_s28, 4  ;;  %s196_s29 = int_to_ptr.vmem [resolvable:$true] %s195_s29 }
   0x9   : > { %p1109_p5 = pnand %p686_p2, %p183_p3  ;;  %s1030_s7 = smov [#allocation7]  }
   0xa   : > { %s1292_s26 = scalar_select %p1105_p4, 1, 0 }
   0xb   : > { %s1293_s27 = scalar_select %p1109_p5, 1, 0 }
   0xc   : > { %p780_p6 = pneg %p1109_p5  ;;  %s211_s8 = sshll.u32 %s1030_s7, 4  ;;  %s212_s8 = int_to_ptr.vmem [resolvable:$true] %s211_s8 }
   0xd   : > { %s890_s9 = scalar_lea.vmem %s196_s29, 640  ;;  %p898_p12 = scmp.lt.s32.totalorder %s196_s29, %s196_s29 }
   0xe   : > { %p1117_p7 = pnand %p780_p6, %p1289_p1  ;;  %p891_p9 = scmp.ne.s32.totalorder %s196_s29, %s890_s9 }
   0xf   : > { %p899_p13 = scmp.lt.s32.totalorder %s890_s9, %s890_s9 }
  0x10   : > { %p881_p8 = pneg %p1117_p7 }
  0x11   : > { %p900_p0 = por %p899_p13, %p898_p12 }
  0x12   : > { %p893_p10 = pnand %p891_p9, %p881_p8 }
  0x14   : > { %p894_p11 = pneg %p893_p10 }
  0x16   : > { %p901_p2 = pnand %p900_p0, %p894_p11 }
  0x18   : > { %904 = shalt.err (!%p901_p2)
}
  0x19   : > { %s1031_s10 = smov 64   ;;  %s1032_s11 = smov 4  }
  0x1a   : > { %783 = dma.hbm_to_vmem [thread:$0]  (!%p1117_p7), %s1283_s1, 640, %s196_s29, [#allocation6], %s1031_s10, %s1031_s10, %s1032_s11  }
  0x1b   : > { %s916_s14 = scalar_lea.vmem %s212_s8, 256  ;;  %p924_p10 = scmp.lt.s32.totalorder %s212_s8, %s212_s8 }
  0x1c   : > { %p917_p3 = scmp.ne.s32.totalorder %s212_s8, %s916_s14  ;;  %p925_p11 = scmp.lt.s32.totalorder %s916_s14, %s916_s14 }
  0x1e   : > { %p919_p6 = pnand %p917_p3, %p881_p8  ;;  %p926_p12 = por %p925_p11, %p924_p10 }
  0x20   : > { %p920_p9 = pneg %p919_p6 }
  0x22   : > { %p927_p13 = pnand %p926_p12, %p920_p9 }
  0x24   : > { %930 = shalt.err (!%p927_p13)
}
  0x25   : > { %s1033_s15 = smov 128   ;;  %s1034_s16 = smov 8  }
  0x26   : > { %786 = dma.hbm_to_vmem [thread:$0]  (!%p1117_p7), %s1285_s3, 256, %s212_s8, [#allocation6], %s1033_s15, %s1033_s15, %s1034_s16  }
  0x27   : > { %s1035_s19 = smov [#allocation8]   ;;  %s1146_s21 = sadd.s32 1, %s1027_s24  }
  0x28   : > { %s224_s20 = sshll.u32 %s1035_s19, 4  ;;  %s225_s20 = int_to_ptr.vmem [resolvable:$true] %s224_s20 }
  0x29   : > { %s942_s28 = scalar_lea.vmem %s225_s20, 1024  ;;  %p950_p6 = scmp.lt.s32.totalorder %s225_s20, %s225_s20 }
  0x2a   : > { %p943_p0 = scmp.ne.s32.totalorder %s225_s20, %s942_s28  ;;  %p951_p9 = scmp.lt.s32.totalorder %s942_s28, %s942_s28 }
  0x2c   : > { %p945_p2 = pnand %p943_p0, %p881_p8  ;;  %p952_p10 = por %p951_p9, %p950_p6 }
  0x2e   : > { %p946_p3 = pneg %p945_p2 }
  0x30   : > { %p953_p11 = pnand %p952_p10, %p946_p3 }
  0x32   : > { %956 = shalt.err (!%p953_p11)
}
  0x33   : > { %789 = dma.hbm_to_vmem [thread:$0]  (!%p1117_p7), %s1286_s4, 1024, %s225_s20, [#allocation9], %s1031_s10, %s1031_s10, %s1032_s11  }
  0x34   : > { %s25_s8 = ssub.s32 %s1027_s24, %s1146_s21  ;;  %s28_s9 = sadd.s32 1, %s1023_s23 }
  0x35   : > { %p26_p8 = scmp.eq.s32.totalorder %s25_s8, 0  ;;  %p35_p12 = scmp.ne.s32.totalorder %s1023_s23, %s1019_s22 }
  0x36   : > { %p36_p13 = scmp.eq.s32.totalorder %s1027_s24, 0  ;;  %p797_p0 = scmp.lt.s32.totalorder %s1027_s24, 2 }
  0x37   : > { %s1167_s30 = scalar_select %p26_p8, %s1023_s23, %s28_s9  }
  0x38   : > { %p37_p2 = por %p36_p13, %p35_p12  ;;  %s241_s12 = sand.u32 1, %s1023_s23  }
  0x39   : > { %s691_s13 = sshll.u32 %s241_s12, 4  ;;  %s716_s14 = sshll.u32 %s1027_s24, 8 }
  0x3a   : > { %s1174_s19 = scalar_lea.hbm %s1282_s0, %s716_s14  ;;  %s245_s10 = scalar_lea.vmem [#allocation3], %s691_s13 }
  0x3b   : > { %s252_s11 = sshll.u32 %s245_s10, 4  ;;  %p1178_p7 = pnand %p797_p0, %p37_p2  ;;  %s1176_s11 = int_to_ptr.vmem [resolvable:$true] %s252_s11 }
  0x3c   : > { %s1182_s28 = scalar_lea.sflag [#allocation4], %s241_s12  ;;  %s957_s24 = scalar_lea.hbm %s1174_s19, 256 }
  0x3d   : > { %p958_p3 = scmp.ne.s32.totalorder %s1174_s19, %s957_s24  ;;  %p959_p6 = pneg %p1178_p7 }
  0x3e   : > { %s962_s8 = scalar_lea.hbm %s1282_s0, 512  ;;  %p963_p11 = scmp.lt.s32.totalorder %s1174_s19, %s1282_s0 }
  0x3f   : > { %p960_p9 = pnand %p959_p6, %p958_p3  ;;  %p964_p8 = scmp.lt.s32.totalorder %s962_s8, %s957_s24 }
  0x41   : > { %p961_p10 = pneg %p960_p9  ;;  %p965_p12 = por %p964_p8, %p963_p11 }
  0x43   : > { %p966_p13 = pnand %p965_p12, %p961_p10 }
  0x45   : > { %969 = shalt.err (!%p966_p13)
}
  0x46   : > { %s970_s12 = scalar_lea.vmem %s1176_s11, 256  ;;  %s1036_s14 = smov [#allocation3]  }
  0x47   : > { %p971_p0 = scmp.ne.s32.totalorder %s1176_s11, %s970_s12  ;;  %s975_s17 = sshll.u32 %s1036_s14, 4  ;;  %s976_s17 = int_to_ptr.vmem [resolvable:$false] %s975_s17 }
  0x48   : > { %s977_s18 = scalar_lea.vmem %s976_s17, 512  ;;  %p978_p9 = scmp.lt.s32.totalorder %s1176_s11, %s976_s17 }
  0x49   : > { %p973_p2 = pnand %p971_p0, %p959_p6  ;;  %p979_p1 = scmp.lt.s32.totalorder %s977_s18, %s970_s12 }
  0x4b   : > { %p974_p3 = pneg %p973_p2  ;;  %p980_p4 = por %p979_p1, %p978_p9 }
  0x4d   : > { %p981_p5 = pnand %p980_p4, %p974_p3 }
  0x4f   : > { %984 = shalt.err (!%p981_p5)
}
  0x50   : > { %793 = dma.hbm_to_vmem [thread:$0]  (!%p1178_p7), %s1174_s19, 256, %s1176_s11, %s1182_s28, %s1033_s15, %s1033_s15, %s1034_s16  }
  0x51   : > { %p1296_p6 = scmp.ne.s32.totalorder %s1293_s27, 0 }
  0x52   : > { %s266_s10 = sand.u32 (!%p1296_p6), 1, %s1019_s22   ;;  %p1297_p1 = scmp.ne.s32.totalorder (!%p1296_p6), %s1292_s26, 0 }
  0x53   : > { %264 = sbr.rel (%p1296_p6) target bundleno = 655 (0x28f), region = 44  ;;  %s695_s24 = sshll.u32 (!%p1296_p6), %s266_s10, 4 }
  0x54   : > { %s267_s29 = scalar_lea.sflag (!%p1296_p6), [#allocation4], %s266_s10  ;;  %s270_s7 = scalar_lea.vmem (!%p1296_p6), [#allocation3], %s695_s24 }
  0x58   : > { %1002 = dma.done.wait (%p1297_p1), %s267_s29, 256  }
  0x59   : > { %1004 = vsyncadd (%p1297_p1), %s267_s29, 4294967040  ;;  %p1298_p4 = scmp.eq.s32.totalorder %s1097_s25, 0 }
  0x5b   : > { %1006 = dma.done.wait (%p1298_p4), [#allocation6], 896   ;;  %p1299_p5 = pmov %p1298_p4 }
  0x5c   : > { %p1300_p7 = pmov %p1298_p4 }
  0x5d   : > { %1008 = vsyncadd (%p1299_p5), [#allocation6], 4294966400 }
  0x5e   : > { %1010 = dma.done.wait (%p1300_p7), [#allocation9], 1024   ;;  %p1301_p10 = pmov %p1298_p4 }
  0x5f   : > { %v331_v0 = vlaneseq  ;;  %v1037_v1 = vmov 0.0   ;;  %v1223_v3 = vld [vmem:[%s270_s7] sm:$0xff]  ;;  %v1225_v4 = vld [vmem:[%s270_s7 + $0x8] sm:$0xff]  ;;  %s1038_s26 = smov 16   ;;  %s1039_s27 = smov 48   ;;  %vm1040_vm4 = vmmov 0  }
  0x60   : > { %1012 = vsyncadd (%p1301_p10), [#allocation9], 4294966272  ;;  %732 = vmatprep.subr.bf16.mxu0 %v1037_v1  ;;  %746 = vmatprep.subr.bf16.mxu1 %v1037_v1  ;;  %v329_v5 = vrot.slane %v1223_v3, 1  ;;  %v330_v6 = vrot.slane %v1225_v4, 1  ;;  %v341_v7 = vrot.slane %v1223_v3, 3  ;;  %v342_v8 = vrot.slane %v1225_v4, 3 }
  0x61   : > { %v332_v2 = vshrl.u32 %v331_v0, 7  ;;  %v336_v9 = vrot.slane %v1223_v3, 2  ;;  %v337_v10 = vrot.slane %v1225_v4, 2  ;;  %v346_v11 = vrot.slane %v1223_v3, 4  ;;  %v866_v13 = vld [vmem:[#allocation5 + $0x20] sm:$0xff]   ;;  %v867_v22 = vld [vmem:[#allocation5 + $0x18] sm:$0xff]   ;;  %742 = vmatprep.mubr.msk.bf16.mxu0 %vm1040_vm4, %v1037_v1  ;;  %762 = vmatprep.mubr.msk.bf16.mxu1 %vm1040_vm4, %v1037_v1 }
  0x62   : > { %v347_v12 = vrot.slane %v1225_v4, 4  ;;  %733 = vmatpush3.bf16.msra.mxu0 %v866_v13  ;;  %v868_v27 = vld [vmem:[#allocation5 + $0x10] sm:$0xff]   ;;  %s1041_s15 = smov 32   ;;  %s1042_s16 = smov 64   ;;  %v869_v28 = vld [vmem:[#allocation5 + $0x8] sm:$0xff]   ;;  %v870_v29 = vld [vmem:[#allocation5] sm:$0xff]  }
  0x63   : > { %vm333_vm0 = vcmp.lt.s32.totalorder %v332_v2, 7  ;;  %vm343_vm1 = vcmp.lt.s32.totalorder %v332_v2, 5  ;;  %vm338_vm2 = vcmp.lt.s32.totalorder %v332_v2, 6  ;;  %vm348_vm3 = vcmp.lt.s32.totalorder %v332_v2, 4  ;;  %734 = vmatprep.subr.bf16.mxu0 %v1037_v1  ;;  %v871_v51 = vld [vmem:[#allocation8 + $0x38] sm:$0xff]   ;;  %v872_v52 = vld [vmem:[#allocation8 + $0x30] sm:$0xff]  }
  0x64   : > { %v334_v14 = vsel %vm333_vm0, %v329_v5, %v330_v6  ;;  %v335_v15 = vsel %vm333_vm0, %v330_v6, %v329_v5  ;;  %v344_v16 = vsel %vm343_vm1, %v341_v7, %v342_v8  ;;  %v345_v17 = vsel %vm343_vm1, %v342_v8, %v341_v7  ;;  %747 = vmatpush3.bf16.msra.mxu1 %v871_v51  ;;  %v873_v53 = vld [vmem:[#allocation8 + $0x28] sm:$0xff]   ;;  %v874_v54 = vld [vmem:[#allocation8 + $0x20] sm:$0xff]   ;;  %v875_v55 = vld [vmem:[#allocation8 + $0x18] sm:$0xff]   ;;  %p310_p11 = scmp.lt.s32.totalorder %s1097_s25, 1 }
  0x65   : > { %v846_v18 = vpack.i.bf16 %v335_v15, %v334_v14  ;;  %v856_v19 = vpack.i.bf16 %v345_v17, %v344_v16  ;;  %v339_v20 = vsel %vm338_vm2, %v336_v9, %v337_v10  ;;  %v340_v21 = vsel %vm338_vm2, %v337_v10, %v336_v9  ;;  %748 = vmatprep.subr.bf16.mxu1 %v1037_v1  ;;  %v876_v56 = vld [vmem:[#allocation8 + $0x10] sm:$0xff]   ;;  %v877_v57 = vld [vmem:[#allocation8 + $0x8] sm:$0xff]   ;;  %v878_v58 = vld [vmem:[#allocation8] sm:$0xff]  }
  0x66   : > { %v349_v23 = vsel %vm348_vm3, %v346_v11, %v347_v12  ;;  %v350_v24 = vsel %vm348_vm3, %v347_v12, %v346_v11  ;;  %v851_v25 = vpack.i.bf16 %v340_v21, %v339_v20  ;;  %735 = vmatpush3.bf16.msra.mxu0 %v867_v22  ;;  %vm383_vm5 = vcmask 130048   ;;  %v699_v59 = vld [vmem:[%s1284_s2] ss:$0 sm:$0xff]  ;;  %s1308_s25 = smov (!%p310_p11, %s1097_s25), 1 }
  0x67   : > { %847 = vrot.lane.b32.xlu0 %v846_v18, %s1038_s26  ;;  %857 = vrot.lane.b32.xlu1 %v856_v19, %s1039_s27  ;;  %v861_v26 = vpack.i.bf16 %v350_v24, %v349_v23  ;;  %vm386_vm6 = vcmask 261120   ;;  %vm389_vm7 = vcmask 392192   ;;  %vm392_vm8 = vcmask 523264   ;;  %v507_v17 = vld [vmem:[%s1287_s5] sm:$0x1]  ;;  %s312_s13 = scalar_lea.vmem %s1288_s6, %s1308_s25 }
  0x68   : > { %736 = vmatprep.subr.bf16.mxu0 %v1037_v1  ;;  %vm432_vm9 = vcmask 654336   ;;  %749 = vmatpush3.bf16.msra.mxu1 %v872_v52 }
  0x69   : > { %750 = vmatprep.subr.bf16.mxu1 %v1037_v1 }
  0x6a   : > { %737 = vmatpush3.bf16.msra.mxu0 %v868_v27 }
  0x6b   : > { %852 = vrot.lane.b32.xlu0 %v851_v25, %s1041_s15  ;;  %862 = vrot.lane.b32.xlu1 %v861_v26, %s1042_s16 }
  0x6c   : > { %738 = vmatprep.subr.bf16.mxu0 %v1037_v1  ;;  %751 = vmatpush3.bf16.msra.mxu1 %v873_v53 }
  0x6d   : > { %752 = vmatprep.subr.bf16.mxu1 %v1037_v1 }
  0x6e   : > { %739 = vmatpush3.bf16.msra.mxu0 %v869_v28 }
  0x6f   : > { %740 = vmatprep.subr.bf16.mxu0 %v1037_v1 }
  0x70   : > { %753 = vmatpush3.bf16.msra.mxu1 %v874_v54 }
  0x71   : > { %754 = vmatprep.subr.bf16.mxu1 %v1037_v1 }
  0x72   : > { %741 = vmatpush3.bf16.msra.mxu0 %v870_v29 }
  0x74   : > { %755 = vmatpush3.bf16.msra.mxu1 %v875_v55 }
  0x75   : > { %756 = vmatprep.subr.bf16.mxu1 %v1037_v1 }
  0x78   : > { %757 = vmatpush3.bf16.msra.mxu1 %v876_v56 }
  0x79   : > { %758 = vmatprep.subr.bf16.mxu1 %v1037_v1 }
  0x7c   : > { %759 = vmatpush3.bf16.msra.mxu1 %v877_v57 }
  0x7d   : > { %760 = vmatprep.subr.bf16.mxu1 %v1037_v1 }
  0x80   : > { %761 = vmatpush3.bf16.msra.mxu1 %v878_v58 }
  0xd9   : > { %v848_v30 = vpop.permute.xlu0 %847  ;;  %v858_v31 = vpop.permute.xlu1 %857 }
  0xda   : > { %v850_v32 = vunpack.i.h.bf16 %v848_v30  ;;  %v849_v33 = vunpack.i.l.bf16 %v848_v30  ;;  %v860_v42 = vunpack.i.h.bf16 %v858_v31  ;;  %v859_v43 = vunpack.i.l.bf16 %v858_v31 }
  0xdc   : > { %v385_v40 = vsel %vm383_vm5, %v1225_v4, %v850_v32  ;;  %v384_v41 = vsel %vm383_vm5, %v1223_v3, %v849_v33  ;;  %v325_v3 = vld [vmem:[#allocation7] sm:$0xff]  ;;  %v326_v4 = vld [vmem:[#allocation7 + $0x8] sm:$0xff] }
  0xdd   : > { %v853_v34 = vpop.permute.xlu0 %852  ;;  %v863_v35 = vpop.permute.xlu1 %862 }
  0xde   : > { %v855_v36 = vunpack.i.h.bf16 %v853_v34  ;;  %v854_v37 = vunpack.i.l.bf16 %v853_v34  ;;  %v865_v38 = vunpack.i.h.bf16 %v863_v35  ;;  %v864_v39 = vunpack.i.l.bf16 %v863_v35 }
  0xe0   : > { %v387_v44 = vsel %vm386_vm6, %v384_v41, %v854_v37  ;;  %v388_v45 = vsel %vm386_vm6, %v385_v40, %v855_v36 }
  0xe1   : > { %v390_v46 = vsel %vm389_vm7, %v387_v44, %v859_v43  ;;  %v391_v47 = vsel %vm389_vm7, %v388_v45, %v860_v42 }
  0xe2   : > { %v393_v48 = vsel %vm392_vm8, %v390_v46, %v864_v39  ;;  %v394_v49 = vsel %vm392_vm8, %v391_v47, %v865_v38 }
  0xe3   : > { %v395_v50 = vpack.c.bf16 %v394_v49, %v393_v48 }
  0xe5   : > { %743 = vmatmul.mubr.msk.bf16.vlgmr.msra.gmra.mxu0 %vm432_vm9, %v395_v50 }
 0x1a5   : > { %v470_v60 = vpop.f32.mrf.mxu0 }
 0x1a6   : > { %v471_v61 = vadd.f32 %v699_v59, %v470_v60 }
 0x1a7   : > { %v744_v62 = vpop.f32.mrf.mxu0 }
 0x1a8   : > { %v477_v0 = vmax.f32 %v471_v61, 0.0 }
 0x1a9   : > { %v473_v63 = vpop.f32.mrf.mxu0 }
 0x1aa   : > { %v474_v2 = vadd.f32 %v699_v59, %v473_v63  ;;  %v479_v7 = vmul.f32 %v477_v0, %v325_v3 }
 0x1ab   : > { %v745_v5 = vpop.f32.mrf.mxu0 }
 0x1ac   : > { %v478_v6 = vmax.f32 %v474_v2, 0.0 }
 0x1ae   : > { %v480_v8 = vmul.f32 %v478_v6, %v326_v4 }
 0x1b0   : > { %v481_v1 = vmax.f32 %v479_v7, %v480_v8 }
 0x1b2   : > { %v482_v9 = vrot.slane %v481_v1, 4 }
 0x1b4   : > { %v483_v10 = vmax.f32 %v481_v1, %v482_v9 }
 0x1b6   : > { %v484_v11 = vrot.slane %v483_v10, 2 }
 0x1b8   : > { %v485_v12 = vmax.f32 %v483_v10, %v484_v11 }
 0x1ba   : > { %v486_v13 = vrot.slane %v485_v12, 1 }
 0x1bc   : > { %v487_v14 = vmax.f32 %v485_v12, %v486_v13 }
 0x1be   : > { %488 = vst [vmem:[#allocation2] sm:$0x1] %v487_v14 }
 0x1c5   : > { %v489_v15 = vld [vmem:[#allocation2] sm:$0x1] }
 0x1c6   : > { %v490_v16 = vpack.c.bf16 %v489_v15, %v489_v15 }
 0x1c8   : > { %763 = vmatmul.mubr.bf16.vlgmr.msra.gmra.mxu1 %v490_v16 }
 0x288   : > { %v590_v18 = vpop.f32.mrf.mxu1 }
 0x289   : > { %v591_v19 = vadd.f32 %v590_v18, %v507_v17 }
 0x28a   : > { %v764_v20 = vpop.f32.mrf.mxu1 }
 0x28b   : > { %596 = vst [vmem:[%s312_s13] sm:$0x1] %v591_v19 }
 0x28c   : > { %v593_v21 = vpop.f32.mrf.mxu1 }
 0x28e   : > { %v765_v22 = vpop.f32.mrf.mxu1 }
 0x28f PF: > { %s1302_s12 = smov %s1146_s21  ;;  %p18_p8 = scmp.ge.s32.totalorder %s1146_s21, 4  }
 0x290   : > { %s1303_s21 = smov %s1019_s22  ;;  %s1304_s22 = smov %s1023_s23 }
 0x291   : > { %s1305_s23 = smov %s1167_s30  ;;  %s1306_s24 = smov %s1302_s12 }
 0x292   :  { %20 = sbr.rel (!%p18_p8) target bundleno = 5 (0x5), region = 96 }
 0x297   :  { %614 = vsyncpa [#allocation4], 1 }
 0x298   :  { %616 = vsyncpa [#allocation4 + $0x1], 1 }
 0x299   :  { %617 = vsyncpa [#allocation6], 1 }
 0x29a   :  { %618 = vsyncpa [#allocation9], 1 }

</bundles_post_ra>
